<compile_context>
chip_gen: v5e
topology: v5e:2x2
jax: 0.10.0
libtpu: 0.0.40
codegen_flags: <defaults>
</compile_context>

<pallas_src>
import numpy as np
import jax
import jax.numpy as jnp
from jax.experimental import pallas as pl
from jax.experimental.pallas import tpu as pltpu

EPS = 1e-8
_TK_CAP = 8   # keep the per-k static unroll in the affine kernel short


# ----------------------------------------------------------------------------
# latents + encoder (plain jnp; MXU-hostile tiny MLP, constant-foldable)
# ----------------------------------------------------------------------------
def create_latents(num_classes: int) -> jnp.ndarray:
    lat = np.array(
        [[int(b) for b in bin(i + 1)[2:].zfill(8)] for i in range(num_classes)],
        dtype=np.float32,
    )
    norm = np.maximum(np.linalg.norm(lat, axis=-1, keepdims=True), 1e-12)
    return jnp.asarray(lat / norm)


def encode_styles(latents, params):
    h = jnp.maximum(latents @ params["w1"] + params["b1"], 0.0)
    h = jnp.maximum(h @ params["w2"] + params["b2"], 0.0)
    enc = h @ params["w3"] + params["b3"]
    return enc[:, 0], enc[:, 1]            # style_mean (K,), style_std (K,)


# ----------------------------------------------------------------------------
# per-generation VMEM budgets
# ----------------------------------------------------------------------------
def _budgets():
    """Returns (out_block_budget, stats_block_budget, vmem_limit_bytes)."""
    vmem_phys = 64 << 20                       # conservative default (v7x-safe)
    try:
        info = pltpu.get_tpu_info()
        vmem_phys = int(getattr(info, "vmem_capacity_bytes", vmem_phys))
    except Exception:
        pass
    if vmem_phys >= (100 << 20):               # v5e / v6e: 128 MiB VMEM per core
        return 6 << 20, 8 << 20, 64 << 20
    # v7x (64 MiB per TC) or unknown: 2x(out)+2x(x) worst case <= ~12 MiB
    return 3 << 20, 4 << 20, 48 << 20


# ----------------------------------------------------------------------------
# tile-size helpers (keep blocks lane-dense and within VMEM budgets)
# ----------------------------------------------------------------------------
def _largest_divisor_leq(n, cap):
    cap = int(max(1, min(n, cap)))
    for d in range(cap, 0, -1):
        if n % d == 0:
            return d
    return 1


def _choose_hw_tile(C, hw, budget):
    if C * hw * 4 <= budget:
        return hw
    # wrapper guarantees hw % 128 == 0 whenever tiling is actually needed
    if hw % 128 == 0:
        cap = max(1, (budget // (C * 4)) // 128)
        return 128 * _largest_divisor_leq(hw // 128, cap)
    return hw   # safe fallback (unreachable given wrapper padding)


def _choose_affine_tiles(K, C, hw, budget, tk_cap=_TK_CAP):
    row = C * hw * 4                       # bytes of one k-slice at full HW
    if row <= budget:
        tk = _largest_divisor_leq(K, min(tk_cap, budget // row))
        return tk, hw
    # Row too big: tile HW and use tk=1.  With the K axis innermost, x stays
    # resident across all K iterations, so tk=1 only costs tiny a/b DMAs.
    return 1, _choose_hw_tile(C, hw, budget)


# ----------------------------------------------------------------------------
# kernel 1: per-(n,c) mean / unbiased std over H*W (shifted one-pass sum/sumsq)
# ----------------------------------------------------------------------------
def _make_stats_kernel(hw_valid, hw_pad, thw):
    hw_f = float(hw_valid)
    padded = hw_pad != hw_valid
    n_tiles = hw_pad // thw
    valid_in_last = hw_valid - (n_tiles - 1) * thw   # valid lanes in last tile

    def stats_kernel(x_ref, mean_ref, std_ref, s1_ref, s2_ref, shift_ref):
        h = pl.program_id(1)
        x = x_ref[0]                                         # (C, THW)

        @pl.when(h == 0)
        def _():
            s1_ref[...] = jnp.zeros_like(s1_ref)
            s2_ref[...] = jnp.zeros_like(s2_ref)
            # shift = mean of the first tile; removes sumsq cancellation.  For
            # the single-tile case this makes the variance effectively 2-pass.
            shift_ref[...] = jnp.mean(x, axis=-1, keepdims=True)

        xs = x - shift_ref[...]                              # (C, THW)
        if padded:   # static: mask zero-padded lanes of the last tile
            lane = jax.lax.broadcasted_iota(jnp.int32, xs.shape, 1)
            limit = jnp.where(h == pl.num_programs(1) - 1, valid_in_last, thw)
            xs = jnp.where(lane < limit, xs, 0.0)

        s1_ref[...] += jnp.sum(xs, axis=-1, keepdims=True)   # (C, 1)
        s2_ref[...] += jnp.sum(xs * xs, axis=-1, keepdims=True)

        @pl.when(h == pl.num_programs(1) - 1)
        def _():
            s1 = s1_ref[...]
            s2 = s2_ref[...]
            mean = shift_ref[...] + s1 / hw_f
            # torch .var(dim=2) is unbiased (divide by HW-1), then +eps, sqrt
            var = (s2 - s1 * s1 / hw_f) / (hw_f - 1.0) + EPS
            mean_ref[0] = mean
            std_ref[0] = jnp.sqrt(var)

    return stats_kernel


def run_stats(x_work, hw_valid, budget, vmem_limit):
    N, C, hw_pad = x_work.shape
    thw = _choose_hw_tile(C, hw_pad, budget)
    mean, std = pl.pallas_call(
        _make_stats_kernel(hw_valid, hw_pad, thw),
        out_shape=(jax.ShapeDtypeStruct((N, C, 1), jnp.float32),
                   jax.ShapeDtypeStruct((N, C, 1), jnp.float32)),
        grid=(N, hw_pad // thw),
        in_specs=[pl.BlockSpec((1, C, thw), lambda n, h: (n, 0, h))],
        out_specs=(pl.BlockSpec((1, C, 1), lambda n, h: (n, 0, 0)),
                   pl.BlockSpec((1, C, 1), lambda n, h: (n, 0, 0))),
        scratch_shapes=[pltpu.VMEM((C, 1), jnp.float32)] * 3,
        compiler_params=pltpu.CompilerParams(
            dimension_semantics=("parallel", "arbitrary"),
            vmem_limit_bytes=vmem_limit),
    )(x_work)
    return mean[..., 0], std[..., 0]       # (N, C), (N, C)


# ----------------------------------------------------------------------------
# kernel 2: hot path — streaming per-(n,k,c) affine  out = A*x + B
# ----------------------------------------------------------------------------
def _make_affine_kernel(tk):
    def affine_kernel(a_ref, b_ref, x_ref, out_ref):
        x = x_ref[0]                       # (C, THW)   resident across K axis
        a = a_ref[0]                       # (TK, C, 1)
        b = b_ref[0]                       # (TK, C, 1)
        # per-k stores keep live intermediates at (C, THW), stores start early
        for k in range(tk):                # static unroll, tk <= _TK_CAP
            out_ref[0, k] = (a[k] * x + b[k]).astype(out_ref.dtype)
    return affine_kernel


def run_delta_adain_affine(x_work, a_tbl, b_tbl, out_dtype, budget, vmem_limit):
    N, C, hw_pad = x_work.shape
    K = a_tbl.shape[1]
    tk, thw = _choose_affine_tiles(K, C, hw_pad, budget)

    a4 = a_tbl.reshape(N, K, C, 1)
    b4 = b_tbl.reshape(N, K, C, 1)

    # K axis innermost: x block index is invariant along it -> x stays resident
    # in VMEM (no re-read per kt step).  Keep N and HW "parallel" so a 2-TC
    # part (v7x) can shard; only demote kt when there is parallel work left.
    parallel_extent = N * (hw_pad // thw)
    kt_sem = "arbitrary" if parallel_extent >= 2 else "parallel"

    return pl.pallas_call(
        _make_affine_kernel(tk),
        out_shape=jax.ShapeDtypeStruct((N, K, C, hw_pad), out_dtype),
        grid=(N, hw_pad // thw, K // tk),
        in_specs=[
            pl.BlockSpec((1, tk, C, 1), lambda n, ht, kt: (n, kt, 0, 0)),
            pl.BlockSpec((1, tk, C, 1), lambda n, ht, kt: (n, kt, 0, 0)),
            pl.BlockSpec((1, C, thw), lambda n, ht, kt: (n, 0, ht)),
        ],
        out_specs=pl.BlockSpec((1, tk, C, thw), lambda n, ht, kt: (n, kt, 0, ht)),
        compiler_params=pltpu.CompilerParams(
            dimension_semantics=("parallel", "parallel", kt_sem),
            vmem_limit_bytes=vmem_limit),
    )(a4, b4, x_work)


# ----------------------------------------------------------------------------
# full forward (template_x=None branch of the PyTorch module)
# ----------------------------------------------------------------------------
def delta_adain_forward(x, latents, params, out_dtype=None):
    x = x.astype(jnp.float32)
    N, C, H, W = x.shape
    HW = H * W
    assert HW > 1, "H*W must be > 1 for unbiased variance"
    out_dtype = jnp.float32 if out_dtype is None else out_dtype
    K = latents.shape[0]

    smean, sstd = encode_styles(latents, params)     # (K,), (K,)
    x_flat = x.reshape(N, C, HW)

    out_budget, stats_budget, vmem_limit = _budgets()

    # Ragged-HW fix: pad HW up to a multiple of 128 only when tiling is needed,
    # so blocks stay lane-dense and within the VMEM budget on every generation.
    needs_pad = (HW % 128 != 0) and (C * HW * 4 > out_budget)
    if needs_pad:
        hw_pad = ((HW + 127) // 128) * 128
        x_work = jnp.pad(x_flat, ((0, 0), (0, 0), (0, hw_pad - HW)))
    else:
        x_work = x_flat

    cmean, cstd = run_stats(x_work, HW, stats_budget, vmem_limit)   # (N,C),(N,C)

    # fold delta-AdaIN:  out[n,k,c,:] = A[n,k,c] * x[n,c,:] + B[n,k,c]
    inv_cstd = 1.0 / cstd                                               # (N, C)
    a_tbl = sstd[None, :, None] * inv_cstd[:, None, :] - 1.0            # (N, K, C)
    b_tbl = (smean[None, :, None] - cmean[:, None, :]
             - a_tbl * cmean[:, None, :])                               # (N, K, C)

    out_flat = run_delta_adain_affine(x_work, a_tbl, b_tbl, out_dtype,
                                      out_budget, vmem_limit)           # (N,K,C,HWp)
    if needs_pad:
        out_flat = out_flat[..., :HW]
    return out_flat.reshape(N, K, C, H, W)


# ----------------------------------------------------------------------------
# pure-JAX reference for correctness check
# ----------------------------------------------------------------------------
def reference_forward(x, latents, params):
    h = jnp.maximum(latents @ params["w1"] + params["b1"], 0.0)
    h = jnp.maximum(h @ params["w2"] + params["b2"], 0.0)
    enc = h @ params["w3"] + params["b3"]
    smean, sstd = enc[:, 0], enc[:, 1]

    N, C, H, W = x.shape
    K = latents.shape[0]
    xf = x.reshape(N, C, -1)
    cmean = xf.mean(-1)
    cstd = jnp.sqrt(xf.var(-1, ddof=1) + EPS)
    cnorm = (xf - cmean[..., None]) / cstd[..., None]
    out = ((sstd[None, :, None, None] - cstd[:, None, :, None]) * cnorm[:, None, :, :]
           + (smean[None, :, None, None] - cmean[:, None, :, None]))
    return out.reshape(N, K, C, H, W)


# ----------------------------------------------------------------------------
if __name__ == "__main__":
    num_classes = 10                       # K (module default is 100)
    N, C, H, W = 2, 4, 16, 16

    key = jax.random.PRNGKey(0)
    kx, k1, k2, k3, k4, k5, k6 = jax.random.split(key, 7)

    x = jax.random.normal(kx, (N, C, H, W), dtype=jnp.float32)

    # deterministic synthetic MLP parameters (stored as (in, out); biases as (1, out))
    params = {
        "w1": jax.random.normal(k1, (8, 16), dtype=jnp.float32) * 0.3,
        "b1": jax.random.normal(k2, (1, 16), dtype=jnp.float32) * 0.1,
        "w2": jax.random.normal(k3, (16, 32), dtype=jnp.float32) * 0.3,
        "b2": jax.random.normal(k4, (1, 32), dtype=jnp.float32) * 0.1,
        "w3": jax.random.normal(k5, (32, 2), dtype=jnp.float32) * 0.3,
        "b3": jax.random.normal(k6, (1, 2), dtype=jnp.float32) * 0.1,
    }

    latents = create_latents(num_classes)

    out = jax.block_until_ready(delta_adain_forward(x, latents, params))
    ref = reference_forward(x, latents, params)

    assert out.shape == (N, num_classes, C, H, W), out.shape
    np.testing.assert_allclose(np.asarray(out), np.asarray(ref), rtol=1e-5, atol=2e-5)

    print("KERNEL_OK")
</pallas_src>

<mosaic_0001>
module attributes {stable_mosaic.version = 11 : i64} {
  func.func @stats_kernel(%arg0: i32, %arg1: i32, %arg2: memref<1x4x256xf32, #tpu.memory_space<vmem>>, %arg3: memref<1x4x1xf32, #tpu.memory_space<vmem>>, %arg4: memref<1x4x1xf32, #tpu.memory_space<vmem>>, %arg5: memref<4x1xf32, #tpu.memory_space<vmem>>, %arg6: memref<4x1xf32, #tpu.memory_space<vmem>>, %arg7: memref<4x1xf32, #tpu.memory_space<vmem>>) attributes {dimension_semantics = [#tpu.dimension_semantics<parallel>, #tpu.dimension_semantics<arbitrary>], iteration_bounds = array<i64: 2, 1>, scalar_prefetch = 0 : i64, scratch_operands = 3 : i64, tpu.core_type = #tpu.core_type<tc>, window_params = [{transform_indices = @transform_0, window_bounds = array<i64: 1, 4, 256>}, {transform_indices = @transform_1, window_bounds = array<i64: 1, 4, 1>}, {transform_indices = @transform_2, window_bounds = array<i64: 1, 4, 1>}]} {
    %c0 = arith.constant 0 : index
    %c0_0 = arith.constant 0 : index
    %c0_1 = arith.constant 0 : index
    %0 = vector.load %arg2[%c0, %c0_0, %c0_1] : memref<1x4x256xf32, #tpu.memory_space<vmem>>, vector<1x4x256xf32>
    %1 = vector.shape_cast %0 : vector<1x4x256xf32> to vector<4x256xf32>
    %c0_i32 = arith.constant 0 : i32
    %2 = arith.cmpi eq, %arg1, %c0_i32 : i32
    %3 = arith.extui %2 : i1 to i32
    %c0_i32_2 = arith.constant 0 : i32
    %4 = arith.cmpi ne, %3, %c0_i32_2 : i32
    scf.if %4 {
      %cst_16 = arith.constant 0.000000e+00 : f32
      %22 = vector.broadcast %cst_16 : f32 to vector<4x1xf32>
      %c0_17 = arith.constant 0 : index
      %c0_18 = arith.constant 0 : index
      %23 = vector.load %arg5[%c0_17, %c0_18] : memref<4x1xf32, #tpu.memory_space<vmem>>, vector<4x1xf32>
      tpu.vector_store %arg5[%c0_17, %c0_18], %22 {strides = array<i32>} : memref<4x1xf32, #tpu.memory_space<vmem>>, vector<4x1xf32>,
      %cst_19 = arith.constant 0.000000e+00 : f32
      %24 = vector.broadcast %cst_19 : f32 to vector<4x1xf32>
      %c0_20 = arith.constant 0 : index
      %c0_21 = arith.constant 0 : index
      %25 = vector.load %arg6[%c0_20, %c0_21] : memref<4x1xf32, #tpu.memory_space<vmem>>, vector<4x1xf32>
      tpu.vector_store %arg6[%c0_20, %c0_21], %24 {strides = array<i32>} : memref<4x1xf32, #tpu.memory_space<vmem>>, vector<4x1xf32>,
      %cst_22 = arith.constant dense<0.000000e+00> : vector<4xf32>
      %26 = vector.multi_reduction <add>, %1, %cst_22 [1] : vector<4x256xf32> to vector<4xf32>
      %27 = vector.shape_cast %26 : vector<4xf32> to vector<4x1xf32>
      %cst_23 = arith.constant 2.560000e+02 : f32
      %28 = vector.broadcast %cst_23 : f32 to vector<4x1xf32>
      %29 = arith.divf %27, %28 : vector<4x1xf32>
      %c0_24 = arith.constant 0 : index
      %c0_25 = arith.constant 0 : index
      %30 = vector.load %arg7[%c0_24, %c0_25] : memref<4x1xf32, #tpu.memory_space<vmem>>, vector<4x1xf32>
      tpu.vector_store %arg7[%c0_24, %c0_25], %29 {strides = array<i32>} : memref<4x1xf32, #tpu.memory_space<vmem>>, vector<4x1xf32>,
    } else {
    }
    %c0_3 = arith.constant 0 : index
    %c0_4 = arith.constant 0 : index
    %5 = vector.load %arg7[%c0_3, %c0_4] : memref<4x1xf32, #tpu.memory_space<vmem>>, vector<4x1xf32>
    %6 = vector.broadcast %5 : vector<4x1xf32> to vector<4x256xf32>
    %7 = arith.subf %1, %6 : vector<4x256xf32>
    %c0_5 = arith.constant 0 : index
    %c0_6 = arith.constant 0 : index
    %8 = vector.load %arg5[%c0_5, %c0_6] : memref<4x1xf32, #tpu.memory_space<vmem>>, vector<4x1xf32>
    %cst = arith.constant dense<0.000000e+00> : vector<4xf32>
    %9 = vector.multi_reduction <add>, %7, %cst [1] : vector<4x256xf32> to vector<4xf32>
    %10 = vector.shape_cast %9 : vector<4xf32> to vector<4x1xf32>
    %11 = arith.addf %8, %10 : vector<4x1xf32>
    %c0_7 = arith.constant 0 : index
    %c0_8 = arith.constant 0 : index
    %12 = vector.load %arg5[%c0_7, %c0_8] : memref<4x1xf32, #tpu.memory_space<vmem>>, vector<4x1xf32>
    tpu.vector_store %arg5[%c0_7, %c0_8], %11 {strides = array<i32>} : memref<4x1xf32, #tpu.memory_space<vmem>>, vector<4x1xf32>,
    %c0_9 = arith.constant 0 : index
    %c0_10 = arith.constant 0 : index
    %13 = vector.load %arg6[%c0_9, %c0_10] : memref<4x1xf32, #tpu.memory_space<vmem>>, vector<4x1xf32>
    %14 = arith.mulf %7, %7 : vector<4x256xf32>
    %cst_11 = arith.constant dense<0.000000e+00> : vector<4xf32>
    %15 = vector.multi_reduction <add>, %14, %cst_11 [1] : vector<4x256xf32> to vector<4xf32>
    %16 = vector.shape_cast %15 : vector<4xf32> to vector<4x1xf32>
    %17 = arith.addf %13, %16 : vector<4x1xf32>
    %c0_12 = arith.constant 0 : index
    %c0_13 = arith.constant 0 : index
    %18 = vector.load %arg6[%c0_12, %c0_13] : memref<4x1xf32, #tpu.memory_space<vmem>>, vector<4x1xf32>
    tpu.vector_store %arg6[%c0_12, %c0_13], %17 {strides = array<i32>} : memref<4x1xf32, #tpu.memory_space<vmem>>, vector<4x1xf32>,
    %c0_i32_14 = arith.constant 0 : i32
    %19 = arith.cmpi eq, %arg1, %c0_i32_14 : i32
    %20 = arith.extui %19 : i1 to i32
    %c0_i32_15 = arith.constant 0 : i32
    %21 = arith.cmpi ne, %20, %c0_i32_15 : i32
    scf.if %21 {
      %c0_16 = arith.constant 0 : index
      %c0_17 = arith.constant 0 : index
      %22 = vector.load %arg5[%c0_16, %c0_17] : memref<4x1xf32, #tpu.memory_space<vmem>>, vector<4x1xf32>
      %c0_18 = arith.constant 0 : index
      %c0_19 = arith.constant 0 : index
      %23 = vector.load %arg6[%c0_18, %c0_19] : memref<4x1xf32, #tpu.memory_space<vmem>>, vector<4x1xf32>
      %c0_20 = arith.constant 0 : index
      %c0_21 = arith.constant 0 : index
      %24 = vector.load %arg7[%c0_20, %c0_21] : memref<4x1xf32, #tpu.memory_space<vmem>>, vector<4x1xf32>
      %cst_22 = arith.constant 2.560000e+02 : f32
      %25 = vector.broadcast %cst_22 : f32 to vector<4x1xf32>
      %26 = arith.divf %22, %25 : vector<4x1xf32>
      %27 = arith.addf %24, %26 : vector<4x1xf32>
      %28 = arith.mulf %22, %22 : vector<4x1xf32>
      %cst_23 = arith.constant 2.560000e+02 : f32
      %29 = vector.broadcast %cst_23 : f32 to vector<4x1xf32>
      %30 = arith.divf %28, %29 : vector<4x1xf32>
      %31 = arith.subf %23, %30 : vector<4x1xf32>
      %cst_24 = arith.constant 2.550000e+02 : f32
      %32 = vector.broadcast %cst_24 : f32 to vector<4x1xf32>
      %33 = arith.divf %31, %32 : vector<4x1xf32>
      %cst_25 = arith.constant 9.99999993E-9 : f32
      %34 = vector.broadcast %cst_25 : f32 to vector<4x1xf32>
      %35 = arith.addf %33, %34 : vector<4x1xf32>
      %c0_26 = arith.constant 0 : index
      %c0_27 = arith.constant 0 : index
      %c0_28 = arith.constant 0 : index
      %36 = vector.load %arg3[%c0_26, %c0_27, %c0_28] : memref<1x4x1xf32, #tpu.memory_space<vmem>>, vector<1x4x1xf32>
      %37 = vector.shape_cast %36 : vector<1x4x1xf32> to vector<4x1xf32>
      %38 = vector.shape_cast %27 : vector<4x1xf32> to vector<1x4x1xf32>
      tpu.vector_store %arg3[%c0_26, %c0_27, %c0_28], %38 {strides = array<i32>} : memref<1x4x1xf32, #tpu.memory_space<vmem>>, vector<1x4x1xf32>,
      %39 = math.sqrt %35 : vector<4x1xf32>
      %c0_29 = arith.constant 0 : index
      %c0_30 = arith.constant 0 : index
      %c0_31 = arith.constant 0 : index
      %40 = vector.load %arg4[%c0_29, %c0_30, %c0_31] : memref<1x4x1xf32, #tpu.memory_space<vmem>>, vector<1x4x1xf32>
      %41 = vector.shape_cast %40 : vector<1x4x1xf32> to vector<4x1xf32>
      %42 = vector.shape_cast %39 : vector<4x1xf32> to vector<1x4x1xf32>
      tpu.vector_store %arg4[%c0_29, %c0_30, %c0_31], %42 {strides = array<i32>} : memref<1x4x1xf32, #tpu.memory_space<vmem>>, vector<1x4x1xf32>,
    } else {
    }
    return
  }
  func.func @transform_0(%arg0: i32, %arg1: i32) -> (i32, i32, i32) {
    %c0_i32 = arith.constant 0 : i32
    %c0_i32_0 = arith.constant 0 : i32
    return %arg0, %c0_i32, %arg1 : i32, i32, i32
  }
  func.func @transform_1(%arg0: i32, %arg1: i32) -> (i32, i32, i32) {
    %c0_i32 = arith.constant 0 : i32
    %c0_i32_0 = arith.constant 0 : i32
    %c0_i32_1 = arith.constant 0 : i32
    return %arg0, %c0_i32, %c0_i32_0 : i32, i32, i32
  }
  func.func @transform_2(%arg0: i32, %arg1: i32) -> (i32, i32, i32) {
    %c0_i32 = arith.constant 0 : i32
    %c0_i32_0 = arith.constant 0 : i32
    %c0_i32_1 = arith.constant 0 : i32
    return %arg0, %c0_i32, %c0_i32_0 : i32, i32, i32
  }
}

</mosaic_0001>

<bundles_post_ra>
// kernel: tpu_custom_call.1
= control target key start
LH: loop header
LB: loop body
LE: loop exit
PB: predicated region body
PF: predicated region fallthrough
CT: control target
= control target key end

     0   :  { %8 = vsyncpa [#allocation6], 0  ;;  %s699_s0 = inlined_call_operand.hbm [shape: f32[2,4,256], index: 0, kind: input, shape index: {}]   ;;  %s700_s1 = inlined_call_operand.vmem [shape: f32[2,4,1], index: 1, kind: output, shape index: {0}]   ;;  %s701_s2 = inlined_call_operand.vmem [shape: f32[2,4,1], index: 2, kind: output, shape index: {1}]  }
   0x1   :  { %10 = vsyncpa [#allocation6 + $0x1], 0  ;;  %s592_s9 = smov 0   ;;  %s594_s10 = smov 0  }
   0x2   :  { %s596_s11 = smov 0   ;;  %s598_s12 = smov 0  }
   0x3   :  { %s600_s13 = smov 0   ;;  %s602_s14 = smov 0  }
   0x4 LB: > { %s409_s15 = sadd.s32 4294967295, %s570_s14   ;;  %s28_s16 = sadd.s32 1, %s566_s13  ;;  %s570_s14 = sphi %s602_s14, %s16_s14   ;;  %s566_s13 = sphi %s600_s13, %s708_s13   ;;  %s562_s12 = sphi %s598_s12, %s707_s12   ;;  %s558_s11 = sphi %s596_s11, %s706_s11   ;;  %s554_s10 = sphi %s594_s10, %s705_s10   ;;  %s550_s9 = sphi %s592_s9, %s704_s9  }
   0x5   : > { %p30_p0 = scmp.ge.s32.totalorder %s28_s16, 2  ;;  %s37_s17 = sadd.s32 1, %s558_s11 }
   0x6   : > { %p44_p1 = scmp.ne.s32.totalorder %s558_s11, %s554_s10  ;;  %p45_p2 = scmp.eq.s32.totalorder %s570_s14, 0 }
   0x7   : > { %s710_s16 = smov (%p30_p0, %s28_s16), 0  ;;  %p50_p4 = scmp.ne.s32.totalorder %s554_s10, %s550_s9 }
   0x8   : > { %p628_p3 = por %p45_p2, %p44_p1  ;;  %s32_s19 = ssub.s32 %s566_s13, %s710_s16 }
   0x9   : > { %p51_p5 = scmp.eq.s32.totalorder %s409_s15, 0  ;;  %p35_p6 = scmp.eq.s32.totalorder %s32_s19, 0 }
   0xa   : > { %p429_p8 = scmp.lt.s32.totalorder %s570_s14, 2  ;;  %s126_s22 = sand.u32 1, %s558_s11  }
   0xb   : > { %p635_p7 = por %p51_p5, %p50_p4  ;;  %s422_s23 = sshll.u32 %s566_s13, 3 }
   0xc   : > { %s641_s21 = scalar_select %p35_p6, %s558_s11, %s37_s17  }
   0xd   : > { %s413_s24 = sshll.u32 %s126_s22, 3  ;;  %s137_s27 = scalar_lea.hbm %s699_s0, %s422_s23 }
   0xe   : > { %s139_s28 = sshll.u32 %s137_s27, 4  ;;  %s130_s29 = scalar_lea.vmem [#allocation5], %s413_s24  ;;  %s140_s28 = int_to_ptr.hbm [resolvable:$true] %s139_s28 }
   0xf   : > { %s141_s30 = sshll.u32 %s130_s29, 4  ;;  %p426_p9 = pnand %p429_p8, %p628_p3  ;;  %s142_s30 = int_to_ptr.vmem [resolvable:$true] %s141_s30 }
  0x10   : > { %p416_p10 = scmp.ge.s32.totalorder %s570_s14, 1  ;;  %p146_p11 = scmp.lt.s32.totalorder %s570_s14, 3 }
  0x11   : > { %s127_s3 = scalar_lea.sflag [#allocation6], %s126_s22 }
  0x12   : > { %428 = dma.hbm_to_vmem [thread:$0]  (!%p426_p9), %s140_s28, 128, %s142_s30, %s127_s3  }
  0x13   : > { %p147_p12 = pnand %p416_p10, %p146_p11 }
  0x14   : > { %s152_s4 = sand.u32 (!%p147_p12), 1, %s554_s10  }
  0x15   : > { %150 = sbr.rel (%p147_p12) target bundleno = 457 (0x1c9), region = 24  ;;  %s417_s5 = sshll.u32 (!%p147_p12), %s152_s4, 3 }
  0x16   : > { %s153_s6 = scalar_lea.sflag (!%p147_p12), [#allocation6], %s152_s4  ;;  %s156_s7 = scalar_lea.vmem (!%p147_p12), [#allocation5], %s417_s5 }
  0x1a   : > { %545 = dma.done.wait (%p635_p7), %s153_s6, 128  }
  0x1b   : > { %547 = vsyncadd (%p635_p7), %s153_s6, 4294967168  ;;  %v190_v0 = vld [vmem:[%s156_s7] sm:$0xff]  ;;  %vm204_vm0 = vcmask 1043456   ;;  %v572_v6 = vmov 256.0   ;;  %v573_v7 = vmov 0   ;;  %vm195_vm2 = vcmask 3072  }
  0x1c   : > { %199 = vst [vmem:[#allocation1] ss:$2 sm:$0xff] %v190_v0  ;;  %484 = vrcp.f32 %v572_v6  ;;  %483 = vset.pattern.permute.xlu0 %v573_v7  ;;  %v574_v17 = vmov 839922192   ;;  %v575_v19 = vmov 0.0   ;;  %v576_v35 = vmov 255.0  }
  0x1d   : > { %v225_v18 = vunpack.c.l.s4 %v574_v17  ;;  %196 = vst.msk [vmem:[#allocation2] sm:$0xf] %vm195_vm2, %v575_v19  ;;  %486 = vrcp.f32 %v576_v35  ;;  %p182_p13 = scmp.lt.s32.totalorder %s562_s12, 1 }
  0x1e   : > { %197 = vst.msk [vmem:[#allocation3] sm:$0xf] %vm195_vm2, %v575_v19 }
  0x1f   : > { %v226_v20 = vunpack.c.0.s8 %v225_v18  ;;  %s712_s12 = smov (!%p182_p13, %s562_s12), 1 }
  0x20   : > { %s418_s8 = sshll.u32 %s712_s12, 2 }
  0x21   : > { %s185_s17 = scalar_lea.vmem %s700_s1, %s418_s8  ;;  %s189_s19 = scalar_lea.vmem %s701_s2, %s418_s8 }
  0x22   : > { %v485_v8 = vpop.eup %484 }
  0x23   : > { %v200_v1 = vld.sshfl [vmem:[#allocation1] sm:$0xff pattern:$0x75316420]  ;;  %v201_v2 = vld.sshfl [vmem:[#allocation1 + $0x8] sm:$0xff pattern:$0x75316420]  ;;  %vm215_vm1 = vweird.f32 %v485_v8  ;;  %v487_v37 = vpop.eup %486 }
  0x24   : > { %v205_v3 = vsel %vm204_vm0, %v200_v1, 0.0  ;;  %v206_v4 = vsel %vm204_vm0, %v201_v2, 0.0  ;;  %v211_v9 = vmul.f32 256.0, %v485_v8  ;;  %v230_v36 = vld [vmem:[#allocation2] sm:$0xf]  ;;  %v280_v40 = vmul.f32 255.0, %v487_v37 }
  0x25   : > { %v207_v5 = vadd.f32 %v206_v4, %v205_v3  ;;  %v246_v41 = vld [vmem:[#allocation3] sm:$0xf]  ;;  %vm284_vm3 = vweird.f32 %v487_v37 }
  0x26   : > { %v212_v10 = vsub.f32 1.0, %v211_v9  ;;  %v281_v42 = vsub.f32 1.0, %v280_v40 }
  0x27   : > { %208 = vadd.xlane.f32.xlu0 %v207_v5 }
  0x28   : > { %v213_v11 = vmul.f32 %v485_v8, %v212_v10  ;;  %v282_v46 = vmul.f32 %v487_v37, %v281_v42 }
  0x2a   : > { %v214_v12 = vadd.f32 %v485_v8, %v213_v11  ;;  %v283_v51 = vadd.f32 %v487_v37, %v282_v46 }
  0x2c   : > { %v216_v13 = vsel %vm215_vm1, %v485_v8, %v214_v12  ;;  %v285_v53 = vsel %vm284_vm3, %v487_v37, %v283_v51 }
  0x9a   : > { %v209_v14 = vpop.xlane.xlu0 %208 }
  0x9b   : > { %v217_v15 = vmul.f32 %v216_v13, %v209_v14 }
  0x9d   : > { %218 = vst.msk [vmem:[#allocation4] sm:$0xf] %vm195_vm2, %v217_v15 }
  0xa4   : > { %v219_v16 = vld [vmem:[#allocation4] sm:$0xf] }
  0xa5   : > { %222 = vperm.xlu0 %483, %v219_v16   ;;  %v266_v48 = vld [vmem:[#allocation4] sm:$0xf] }
 0x117   : > { %v223_v21 = vpop.permute.xlu0 %222 }
 0x118   : > { %v227_v22 = vperm.slane %v223_v21, %v226_v20 }
 0x11a   : > { %v229_v23 = vsub.f32 %v190_v0, %v227_v22 }
 0x11c   : > { %232 = vst [vmem:[#allocation1] ss:$2 sm:$0xff] %v229_v23  ;;  %v247_v24 = vmul.f32 %v229_v23, %v229_v23 }
 0x123   : > { %v233_v25 = vld.sshfl [vmem:[#allocation1] sm:$0xff pattern:$0x75316420]  ;;  %v234_v26 = vld.sshfl [vmem:[#allocation1 + $0x8] sm:$0xff pattern:$0x75316420] }
 0x124   : > { %v238_v27 = vsel %vm204_vm0, %v233_v25, 0.0  ;;  %v239_v28 = vsel %vm204_vm0, %v234_v26, 0.0  ;;  %249 = vst [vmem:[#allocation1] ss:$2 sm:$0xff] %v247_v24 }
 0x125   : > { %v240_v29 = vadd.f32 %v239_v28, %v238_v27 }
 0x127   : > { %241 = vadd.xlane.f32.xlu1 %v240_v29 }
 0x12b   : > { %v250_v30 = vld.sshfl [vmem:[#allocation1] sm:$0xff pattern:$0x75316420]  ;;  %v251_v31 = vld.sshfl [vmem:[#allocation1 + $0x8] sm:$0xff pattern:$0x75316420] }
 0x12c   : > { %v254_v32 = vsel %vm204_vm0, %v250_v30, 0.0  ;;  %v255_v33 = vsel %vm204_vm0, %v251_v31, 0.0 }
 0x12d   : > { %v256_v34 = vadd.f32 %v255_v33, %v254_v32 }
 0x12f   : > { %257 = vadd.xlane.f32.xlu1 %v256_v34 }
 0x19a   : > { %v242_v38 = vpop.xlane.xlu1 %241 }
 0x19b   : > { %v243_v39 = vadd.f32 %v242_v38, %v230_v36 }
 0x19d   : > { %245 = vst.msk [vmem:[#allocation2] sm:$0xf] %vm195_vm2, %v243_v39 }
 0x1a2   : > { %v258_v43 = vpop.xlane.xlu1 %257 }
 0x1a3   : > { %v259_v44 = vadd.f32 %v258_v43, %v246_v41 }
 0x1a4   : > { %v264_v45 = vld [vmem:[#allocation2] sm:$0xf] }
 0x1a5   : > { %v274_v47 = vmul.f32 %v264_v45, %v216_v13  ;;  %260 = vst.msk [vmem:[#allocation3] sm:$0xf] %vm195_vm2, %v259_v44  ;;  %v276_v50 = vmul.f32 %v264_v45, %v264_v45 }
 0x1a7   : > { %v275_v49 = vadd.f32 %v274_v47, %v266_v48  ;;  %v277_v52 = vmul.f32 %v276_v50, %v216_v13 }
 0x1a9   : > { %288 = vst.msk [vmem:[%s185_s17] sm:$0xf] %vm195_vm2, %v275_v49 }
 0x1ac   : > { %v265_v54 = vld [vmem:[#allocation3] sm:$0xf] }
 0x1ad   : > { %v278_v55 = vsub.f32 %v265_v54, %v277_v52 }
 0x1af   : > { %v286_v56 = vmul.f32 %v285_v53, %v278_v55 }
 0x1b1   : > { %v287_v57 = vadd.f32 1e-08, %v286_v56 }
 0x1b3   : > { %488 = vrsqrt.f32 %v287_v57  ;;  %vm296_vm4 = vcmp.eq.f32.partialorder %v287_v57, inf  ;;  %v299_v1 = vand.u32 2147483648, %v287_v57  ;;  %vm298_vm5 = vcmp.eq.f32.partialorder %v287_v57, 0.0 }
 0x1b9   : > { %v489_v58 = vpop.eup %488 }
 0x1ba   : > { %v290_v59 = vmul.f32 %v489_v58, %v287_v57 }
 0x1bc   : > { %v291_v60 = vmul.f32 %v489_v58, %v290_v59 }
 0x1be   : > { %v292_v61 = vmul.f32 0.5, %v291_v60 }
 0x1c0   : > { %v293_v62 = vsub.f32 1.5, %v292_v61 }
 0x1c2   : > { %v294_v63 = vmul.f32 %v489_v58, %v293_v62 }
 0x1c4   : > { %v295_v0 = vmul.f32 %v294_v63, %v287_v57 }
 0x1c6   : > { %v297_v2 = vsel %vm296_vm4, %v287_v57, %v295_v0 }
 0x1c7   : > { %v300_v3 = vsel %vm298_vm5, %v299_v1, %v297_v2 }
 0x1c8   : > { %301 = vst.msk [vmem:[%s189_s19] sm:$0xf] %vm195_vm2, %v300_v3 }
 0x1c9 PF: > { %s16_s14 = sadd.s32 1, %s570_s14   ;;  %s704_s9 = smov %s554_s10 }
 0x1ca   : > { %p13_p0 = scmp.ge.s32.totalorder %s16_s14, 4   ;;  %s705_s10 = smov %s558_s11 }
 0x1cb   : > { %s706_s11 = smov %s641_s21  ;;  %s707_s12 = smov %s566_s13 }
 0x1cc   : > { %s708_s13 = smov %s710_s16  ;;  %15 = sbr.rel (!%p13_p0) target bundleno = 4 (0x4), region = 84 }
 0x1d1   :  { %335 = vsyncpa [#allocation6], 1 }
 0x1d2   :  { %337 = vsyncpa [#allocation6 + $0x1], 1 }

</bundles_post_ra>
